<compile_context>
chip_gen: v7x
topology: tpu7x:2x2x1
jax: 0.10.0
libtpu: 0.0.40
codegen_flags: <defaults>
</compile_context>

<pallas_src>
import functools

import jax
import jax.numpy as jnp
from jax.experimental import pallas as pl
from jax.experimental.pallas import tpu as pltpu


def _round_up(x, m):
    return (x + m - 1) // m * m


def _nrde_kernel(h_ref, w1_ref, b1_ref, w2_ref, b2_ref, out_ref, *, compute_dtype):
    """Fused MLP tile: out = tanh(h @ W1 + b1) @ W2 + b2, f32 accumulation."""
    h = h_ref[...].astype(compute_dtype)
    w1 = w1_ref[...].astype(compute_dtype)
    w2 = w2_ref[...].astype(compute_dtype)
    # First matmul; bias add + tanh epilogue kept in f32 (VPU/EUP).
    z = jnp.dot(h, w1, preferred_element_type=jnp.float32)
    z = jnp.tanh(z + b1_ref[...].astype(jnp.float32))
    # Second matmul into the lane-dense (128-multiple) output slab.
    y = jnp.dot(z.astype(compute_dtype), w2, preferred_element_type=jnp.float32)
    y = y + b2_ref[...].astype(jnp.float32)
    out_ref[...] = y.astype(out_ref.dtype)


def nrde_func(h, params, input_dim, logsig_dim, *, block_batch=256, use_bf16=False):
    """Pallas implementation of _NRDEFunc.forward for num_layers=1.

    h:       [batch, input_dim] float32
    params:  dict with w1 [input_dim, hidden], b1 [1, hidden],
                       w2 [hidden, input_dim*logsig_dim], b2 [1, input_dim*logsig_dim]
    returns: [batch, input_dim, logsig_dim]
    """
    # TODO(synk): num_layers > 1 (extra ReLU+Linear(hidden,hidden) blocks) and the
    #             num_layers == 0 single-Linear variant are not emitted; only the
    #             default num_layers=1 configuration is implemented here.
    batch = h.shape[0]
    out_dim = input_dim * logsig_dim
    hidden = params["w1"].shape[1]
    w1, b1 = params["w1"], params["b1"]

    # Lane-dense output: pad the N dimension of the second matmul to 128 lanes.
    out_pad = _round_up(out_dim, 128)
    w2 = jnp.pad(params["w2"], ((0, 0), (0, out_pad - out_dim)))
    b2 = jnp.pad(params["b2"], ((0, 0), (0, out_pad - out_dim)))

    # Batch tile: multiple of 8 sublanes, capped so double-buffered h/out tiles
    # plus resident weights comfortably fit even v7x's smaller VMEM budget.
    tm = _round_up(min(block_batch, _round_up(batch, 8)), 8)
    batch_pad = _round_up(batch, tm)
    if batch_pad != batch:
        h = jnp.pad(h, ((0, batch_pad - batch), (0, 0)))
    grid = (batch_pad // tm,)

    kernel = functools.partial(
        _nrde_kernel,
        compute_dtype=jnp.bfloat16 if use_bf16 else jnp.float32,
    )

    out_padded = pl.pallas_call(
        kernel,
        out_shape=jax.ShapeDtypeStruct((batch_pad, out_pad), h.dtype),
        grid_spec=pltpu.PrefetchScalarGridSpec(
            num_scalar_prefetch=0,
            grid=grid,
            in_specs=[
                # h streams over the batch grid.
                pl.BlockSpec((tm, input_dim), lambda i: (i, 0)),
                # Weights: same block every step -> stay resident in VMEM.
                pl.BlockSpec((input_dim, hidden), lambda i: (0, 0)),
                pl.BlockSpec((1, hidden), lambda i: (0, 0)),
                pl.BlockSpec((hidden, out_pad), lambda i: (0, 0)),
                pl.BlockSpec((1, out_pad), lambda i: (0, 0)),
            ],
            out_specs=pl.BlockSpec((tm, out_pad), lambda i: (i, 0)),
        ),
        compiler_params=pltpu.CompilerParams(
            # Batch axis is embarrassingly parallel -> shard across v7x's 2 TCs.
            dimension_semantics=("parallel",),
        ),
    )(h, w1, b1, w2, b2)

    # Glue: drop padding, then same as PyTorch `.view(-1, input_dim, logsig_dim)`.
    out = out_padded[:batch, :out_dim]
    return out.reshape(batch, input_dim, logsig_dim)


def init_params(key, input_dim, logsig_dim, hidden_dim):
    """Deterministic synthetic parameters (PyTorch Linear-style uniform init)."""
    out_dim = input_dim * logsig_dim
    k1, k2, k3, k4 = jax.random.split(key, 4)
    lim1 = 1.0 / jnp.sqrt(jnp.float32(input_dim))
    lim2 = 1.0 / jnp.sqrt(jnp.float32(hidden_dim))
    return {
        # Stored as [in, out] so the kernel does h @ W (== PyTorch x @ W.T).
        "w1": jax.random.uniform(k1, (input_dim, hidden_dim), jnp.float32, -lim1, lim1),
        "b1": jax.random.uniform(k2, (1, hidden_dim), jnp.float32, -lim1, lim1),
        "w2": jax.random.uniform(k3, (hidden_dim, out_dim), jnp.float32, -lim2, lim2),
        "b2": jax.random.uniform(k4, (1, out_dim), jnp.float32, -lim2, lim2),
    }


def nrde_func_ref(h, params, input_dim, logsig_dim):
    """Plain-JAX reference for correctness checking."""
    z = jnp.tanh(h @ params["w1"] + params["b1"])
    y = z @ params["w2"] + params["b2"]
    return y.reshape(-1, input_dim, logsig_dim)


if __name__ == "__main__":
    input_dim = 8      # hidden-state size of the NRDE
    logsig_dim = 4     # log-signature dimension
    hidden_dim = 15    # matches the module default

    key = jax.random.PRNGKey(0)
    k_h, k_p, k_h2 = jax.random.split(key, 3)
    params = init_params(k_p, input_dim, logsig_dim, hidden_dim)

    # Small shape (single grid step, padded batch / lane-padded output).
    h = jax.random.normal(k_h, (4, input_dim), jnp.float32)
    out = jax.block_until_ready(nrde_func(h, params, input_dim, logsig_dim))
    ref = nrde_func_ref(h, params, input_dim, logsig_dim)
    assert out.shape == (4, input_dim, logsig_dim), out.shape
    assert jnp.allclose(out, ref, atol=1e-5, rtol=1e-5), "small-shape mismatch"

    # Larger batch exercises the batch grid (2 steps, weights VMEM-resident).
    h_big = jax.random.normal(k_h2, (512, input_dim), jnp.float32)
    out_big = jax.block_until_ready(
        nrde_func(h_big, params, input_dim, logsig_dim, block_batch=256))
    ref_big = nrde_func_ref(h_big, params, input_dim, logsig_dim)
    assert out_big.shape == (512, input_dim, logsig_dim), out_big.shape
    assert jnp.allclose(out_big, ref_big, atol=1e-5, rtol=1e-5), "big-shape mismatch"

    # bf16 MXU path (v6e/v7x optimization); f32 accumulation, looser tolerance.
    out_bf16 = jax.block_until_ready(
        nrde_func(h_big, params, input_dim, logsig_dim, use_bf16=True))
    assert jnp.allclose(out_bf16, ref_big, atol=2e-1, rtol=5e-2), "bf16 mismatch"

    print("KERNEL_OK")
</pallas_src>

<mosaic_0001>
module attributes {stable_mosaic.version = 11 : i64} {
  func.func @_nrde_kernel(%arg0: i32, %arg1: memref<8x8xf32, #tpu.memory_space<vmem>>, %arg2: memref<8x15xf32, #tpu.memory_space<vmem>>, %arg3: memref<1x15xf32, #tpu.memory_space<vmem>>, %arg4: memref<15x128xf32, #tpu.memory_space<vmem>>, %arg5: memref<1x128xf32, #tpu.memory_space<vmem>>, %arg6: memref<8x128xf32, #tpu.memory_space<vmem>>) attributes {dimension_semantics = [#tpu.dimension_semantics<parallel>], iteration_bounds = array<i64: 1>, scalar_prefetch = 0 : i64, scratch_operands = 0 : i64, tpu.core_type = #tpu.core_type<tc>, window_params = [{transform_indices = @transform_0, window_bounds = array<i64: 8, 8>}, {pipeline_mode = #tpu.pipeline_mode<synchronous>, transform_indices = @transform_1, window_bounds = array<i64: 8, 15>}, {pipeline_mode = #tpu.pipeline_mode<synchronous>, transform_indices = @transform_2, window_bounds = array<i64: 1, 15>}, {pipeline_mode = #tpu.pipeline_mode<synchronous>, transform_indices = @transform_3, window_bounds = array<i64: 15, 128>}, {pipeline_mode = #tpu.pipeline_mode<synchronous>, transform_indices = @transform_4, window_bounds = array<i64: 1, 128>}, {transform_indices = @transform_5, window_bounds = array<i64: 8, 128>}]} {
    %c0 = arith.constant 0 : index
    %c0_0 = arith.constant 0 : index
    %0 = vector.load %arg1[%c0, %c0_0] : memref<8x8xf32, #tpu.memory_space<vmem>>, vector<8x8xf32>
    %c0_1 = arith.constant 0 : index
    %c0_2 = arith.constant 0 : index
    %1 = vector.load %arg2[%c0_1, %c0_2] : memref<8x15xf32, #tpu.memory_space<vmem>>, vector<8x15xf32>
    %c0_3 = arith.constant 0 : index
    %c0_4 = arith.constant 0 : index
    %2 = vector.load %arg4[%c0_3, %c0_4] : memref<15x128xf32, #tpu.memory_space<vmem>>, vector<15x128xf32>
    %cst = arith.constant dense<0.000000e+00> : vector<8x15xf32>
    %3 = tpu.matmul %0, %1, %cst {dimension_numbers = #tpu.dot_dimension_numbers<[1], [0], [0], [1], [0, 0, 1, 1], [], []>} : vector<8x8xf32>, vector<8x15xf32>, vector<8x15xf32> -> vector<8x15xf32>
    %c0_5 = arith.constant 0 : index
    %c0_6 = arith.constant 0 : index
    %4 = vector.load %arg3[%c0_5, %c0_6] : memref<1x15xf32, #tpu.memory_space<vmem>>, vector<1x15xf32>
    %5 = vector.broadcast %4 : vector<1x15xf32> to vector<8x15xf32>
    %6 = arith.addf %3, %5 : vector<8x15xf32>
    %7 = math.tanh %6 : vector<8x15xf32>
    %cst_7 = arith.constant dense<0.000000e+00> : vector<8x128xf32>
    %8 = tpu.matmul %7, %2, %cst_7 {dimension_numbers = #tpu.dot_dimension_numbers<[1], [0], [0], [1], [0, 0, 1, 1], [], []>} : vector<8x15xf32>, vector<15x128xf32>, vector<8x128xf32> -> vector<8x128xf32>
    %c0_8 = arith.constant 0 : index
    %c0_9 = arith.constant 0 : index
    %9 = vector.load %arg5[%c0_8, %c0_9] : memref<1x128xf32, #tpu.memory_space<vmem>>, vector<1x128xf32>
    %10 = vector.broadcast %9 : vector<1x128xf32> to vector<8x128xf32>
    %11 = arith.addf %8, %10 : vector<8x128xf32>
    %c0_10 = arith.constant 0 : index
    %c0_11 = arith.constant 0 : index
    %12 = vector.load %arg6[%c0_10, %c0_11] : memref<8x128xf32, #tpu.memory_space<vmem>>, vector<8x128xf32>
    tpu.vector_store %arg6[%c0_10, %c0_11], %11 {strides = array<i32>} : memref<8x128xf32, #tpu.memory_space<vmem>>, vector<8x128xf32>,
    return
  }
  func.func @transform_0(%arg0: i32) -> (i32, i32) {
    %c0_i32 = arith.constant 0 : i32
    %c0_i32_0 = arith.constant 0 : i32
    return %arg0, %c0_i32 : i32, i32
  }
  func.func @transform_1(%arg0: i32) -> (i32, i32) {
    %c0_i32 = arith.constant 0 : i32
    %c0_i32_0 = arith.constant 0 : i32
    %c0_i32_1 = arith.constant 0 : i32
    return %c0_i32, %c0_i32_0 : i32, i32
  }
  func.func @transform_2(%arg0: i32) -> (i32, i32) {
    %c0_i32 = arith.constant 0 : i32
    %c0_i32_0 = arith.constant 0 : i32
    %c0_i32_1 = arith.constant 0 : i32
    return %c0_i32, %c0_i32_0 : i32, i32
  }
  func.func @transform_3(%arg0: i32) -> (i32, i32) {
    %c0_i32 = arith.constant 0 : i32
    %c0_i32_0 = arith.constant 0 : i32
    %c0_i32_1 = arith.constant 0 : i32
    return %c0_i32, %c0_i32_0 : i32, i32
  }
  func.func @transform_4(%arg0: i32) -> (i32, i32) {
    %c0_i32 = arith.constant 0 : i32
    %c0_i32_0 = arith.constant 0 : i32
    %c0_i32_1 = arith.constant 0 : i32
    return %c0_i32, %c0_i32_0 : i32, i32
  }
  func.func @transform_5(%arg0: i32) -> (i32, i32) {
    %c0_i32 = arith.constant 0 : i32
    %c0_i32_0 = arith.constant 0 : i32
    return %arg0, %c0_i32 : i32, i32
  }
}

</mosaic_0001>

<bundles_post_ra>
// kernel: tpu_custom_call.1
= control target key start
LH: loop header
LB: loop body
LE: loop exit
PB: predicated region body
PF: predicated region fallthrough
CT: control target
= control target key end

     0   :  { %10 = vsyncpa [#allocation3], 0  ;;  %s472_s0 = inlined_call_operand.hbm [shape: f32[8,8], index: 0, kind: input, shape index: {}]   ;;  %s473_s1 = inlined_call_operand.hbm [shape: f32[8,15], index: 1, kind: input, shape index: {}]   ;;  %s474_s2 = inlined_call_operand.vmem [shape: f32[1,15], index: 2, kind: input, shape index: {}]   ;;  %s475_s3 = inlined_call_operand.hbm [shape: f32[15,128], index: 3, kind: input, shape index: {}]   ;;  %s476_s4 = inlined_call_operand.vmem [shape: f32[1,128], index: 4, kind: input, shape index: {}]   ;;  %s477_s5 = inlined_call_operand.hbm [shape: f32[8,128], index: 5, kind: output, shape index: {}]  }
   0x1   :  { %11 = vsyncpa [#allocation6], 0 }
   0x2   :  { %12 = vsyncpa [#allocation4], 0  ;;  %s378_s18 = smov [#allocation5]   ;;  %s379_s20 = smov [#allocation2]  }
   0x3   :  { %s29_s19 = sshll.u32 %s378_s18, 4  ;;  %s19_s21 = sshll.u32 %s379_s20, 4  ;;  %s30_s19 = int_to_ptr.vmem [resolvable:$true] %s29_s19  ;;  %s20_s21 = int_to_ptr.vmem [resolvable:$true] %s19_s21 }
   0x4   :  { %s284_s24 = scalar_lea.hbm %s473_s1, 128 }
   0x5   :  { %p285_p0 = scmp.ne.s32.totalorder %s473_s1, %s284_s24  ;;  %p288_p1 = scmp.lt.u32.totalorder %s284_s24, %s473_s1 }
   0x7   :  { %p290_p2 = pnand %p288_p1, %p285_p0 }
   0x9   :  { %293 = shalt.err (!%p290_p2)
}
   0xa   :  { %s294_s29 = scalar_lea.vmem %s30_s19, 128  ;;  %p299_p4 = scmp.lt.s32.totalorder %s30_s19, %s30_s19 }
   0xb   :  { %p295_p3 = scmp.ne.s32.totalorder %s30_s19, %s294_s29  ;;  %p300_p5 = scmp.lt.s32.totalorder %s294_s29, %s294_s29 }
   0xd   :  { %p301_p6 = por %p300_p5, %p299_p4 }
   0xf   :  { %p302_p7 = pnand %p301_p6, %p295_p3 }
  0x11   :  { %305 = shalt.err (!%p302_p7)
}
  0x12   :  { %32 = dma.hbm_to_vmem [thread:$0]  %s473_s1, 128, %s30_s19, [#allocation6]  }
  0x13   :  { %s306_s9 = scalar_lea.hbm %s472_s0, 128 }
  0x14   :  { %p307_p8 = scmp.ne.s32.totalorder %s472_s0, %s306_s9  ;;  %p310_p9 = scmp.lt.u32.totalorder %s306_s9, %s472_s0 }
  0x16   :  { %p312_p10 = pnand %p310_p9, %p307_p8 }
  0x18   :  { %315 = shalt.err (!%p312_p10)
}
  0x19   :  { %s316_s14 = scalar_lea.vmem %s20_s21, 128  ;;  %p321_p12 = scmp.lt.s32.totalorder %s20_s21, %s20_s21 }
  0x1a   :  { %p317_p11 = scmp.ne.s32.totalorder %s20_s21, %s316_s14  ;;  %p322_p13 = scmp.lt.s32.totalorder %s316_s14, %s316_s14 }
  0x1c   :  { %p323_p0 = por %p322_p13, %p321_p12 }
  0x1e   :  { %p324_p1 = pnand %p323_p0, %p317_p11 }
  0x20   :  { %327 = shalt.err (!%p324_p1)
}
  0x21   :  { %22 = dma.hbm_to_vmem [thread:$0]  %s472_s0, 128, %s20_s21, [#allocation3]  }
  0x22   :  { %s380_s16 = smov [#allocation7]   ;;  %s328_s20 = scalar_lea.hbm %s475_s3, 256 }
  0x23   :  { %s40_s17 = sshll.u32 %s380_s16, 4  ;;  %p329_p2 = scmp.ne.s32.totalorder %s475_s3, %s328_s20  ;;  %s41_s17 = int_to_ptr.vmem [resolvable:$true] %s40_s17 }
  0x24   :  { %p332_p3 = scmp.lt.u32.totalorder %s328_s20, %s475_s3 }
  0x26   :  { %p334_p4 = pnand %p332_p3, %p329_p2 }
  0x28   :  { %337 = shalt.err (!%p334_p4)
}
  0x29   :  { %s338_s26 = scalar_lea.vmem %s41_s17, 256  ;;  %p343_p6 = scmp.lt.s32.totalorder %s41_s17, %s41_s17 }
  0x2a   :  { %p339_p5 = scmp.ne.s32.totalorder %s41_s17, %s338_s26  ;;  %p344_p7 = scmp.lt.s32.totalorder %s338_s26, %s338_s26 }
  0x2c   :  { %p345_p8 = por %p344_p7, %p343_p6 }
  0x2e   :  { %p346_p9 = pnand %p345_p8, %p339_p5 }
  0x30   :  { %349 = shalt.err (!%p346_p9)
}
  0x31   :  { %s381_s0 = smov 128   ;;  %s382_s21 = smov 8  }
  0x32   :  { %46 = dma.hbm_to_vmem [thread:$0]  %s475_s3, 256, %s41_s17, [#allocation6], %s381_s0, %s381_s0, %s382_s21  }
  0x33   :  { %372 = dma.done.wait [#allocation3], 128  }
  0x34   :  { %373 = vsyncadd [#allocation3], 4294967168 }
  0x35   :  { %374 = dma.done.wait [#allocation6], 384  }
  0x36   :  { %375 = vsyncadd [#allocation6], 4294966912  ;;  %v383_v0 = vmov 0.0   ;;  %vm384_vm0 = vmmov 0   ;;  %vm69_vm1 = vcmask 64512   ;;  %v59_v1 = vld [vmem:[#allocation5] sm:$0xff] }
  0x37   :  { %256 = vmatprep.subr.mxu0 %v383_v0  ;;  %258 = vmatprep.mubr.msk.f32.mxu0 %vm384_vm0, %v383_v0  ;;  %v58_v2 = vld [vmem:[#allocation2] sm:$0xff]  ;;  %v60_v3 = vld [vmem:[#allocation7] sm:$0xff]  ;;  %v61_v4 = vld [vmem:[#allocation7 + $0x8] sm:$0x7f]  ;;  %vm155_vm2 = vcmask 1046528   ;;  %v385_v5 = vmov 0.0|0.0  }
  0x38   :  { %265 = vmatprep.mubr.msk.f32.mxu1 %vm384_vm0, %v383_v0  ;;  %257 = vmatpush3.msra.mxu0 %v59_v1  ;;  %v269_v6 = vpack.c.bf16 %v61_v4, %v60_v3  ;;  %vm386_vm3 = vmmov 1   ;;  %v246_v7 = vld [vmem:[%s474_s2] ss:$0 sm:$0xff]  ;;  %vm151_vm5 = vcmask 121856   ;;  %s387_s7 = smov [#allocation8]  }
  0x39   :  { %259 = vmatmul.mubr.msk.f32.vlgmr.msra.gmra.mrb[0].mxu0 %vm69_vm1, %v58_v2  ;;  %268 = vmatprep.subr.bf16.mxu1 %v385_v5  ;;  %vm270_vm4 = vmpackc.low %vm155_vm2, %vm386_vm3  ;;  %v248_v12 = vld [vmem:[%s476_s4] ss:$0 sm:$0xff]  ;;  %s236_s8 = sshll.u32 %s387_s7, 4  ;;  %s237_s8 = int_to_ptr.vmem [resolvable:$true] %s236_s8 }
  0x3a   :  { %271 = vmatpush3.bf16.msk.msra.mxu1 %vm270_vm4, %v269_v6  ;;  %s350_s9 = scalar_lea.vmem %s237_s8, 128  ;;  %p355_p11 = scmp.lt.s32.totalorder %s237_s8, %s237_s8 }
  0x3b   :  { %p351_p10 = scmp.ne.s32.totalorder %s237_s8, %s350_s9  ;;  %p356_p12 = scmp.lt.s32.totalorder %s350_s9, %s350_s9 }
  0x3d   :  { %p357_p13 = por %p356_p12, %p355_p11 }
  0x3f   :  { %p358_p0 = pnand %p357_p13, %p351_p10 }
 0x10c   :  { %v139_v8 = vpop.f32.mrb[0].mxu0 }
 0x10d   :  { %v140_v9 = vadd.f32 %v246_v7, %v139_v8  ;;  %v260_v10 = vpop.f32.mrb[1].mxu0 }
 0x10f   :  { %282 = vtanh.f32 %v140_v9 }
 0x119   :  { %v283_v11 = vpop.eup %282 }
 0x11a   :  { %266 = vmatmul.mubr.msk.f32.vlgmr.msra.gmra.mrb[0].mxu1 %vm151_vm5, %v283_v11 }
 0x1ed   :  { %v225_v13 = vpop.f32.mrb[0].mxu1 }
 0x1ee   :  { %v226_v14 = vadd.f32 %v248_v12, %v225_v13  ;;  %v267_v15 = vpop.f32.mrb[1].mxu1 }
 0x1f0   :  { %229 = vst [vmem:[#allocation8] sm:$0xff] %v226_v14 }
 0x1f1   :  { %361 = shalt.err (!%p358_p0)
}
 0x1f2   :  { %s362_s11 = scalar_lea.hbm %s477_s5, 128 }
 0x1f3   :  { %p363_p1 = scmp.ne.s32.totalorder %s477_s5, %s362_s11  ;;  %p366_p2 = scmp.lt.u32.totalorder %s362_s11, %s477_s5 }
 0x1f5   :  { %p368_p3 = pnand %p366_p2, %p363_p1 }
 0x1f7   :  { %371 = shalt.err (!%p368_p3)
}
 0x1f8   :  { %239 = dma.vmem_to_hbm [thread:$0]  %s237_s8, 128, %s477_s5, [#allocation4]  }
 0x1f9   :  { %376 = dma.done.wait [#allocation4], 128  }
 0x1fa   :  { %377 = vsyncadd [#allocation4], 4294967168 }
 0x1fb   :  { %243 = vsyncpa [#allocation3], 1 }
 0x1fc   :  { %244 = vsyncpa [#allocation6], 1 }
 0x1fd   :  { %245 = vsyncpa [#allocation4], 1 }

</bundles_post_ra>
